<compile_context>
chip_gen: v6e
topology: v6e:2x2x1
jax: 0.10.0
libtpu: 0.0.40
codegen_flags: <defaults>
</compile_context>

<pallas_src>
import functools
import math

import numpy as np
import jax
import jax.numpy as jnp
from jax.experimental import pallas as pl
from jax.experimental.pallas import tpu as pltpu


def _nearest_src_index(out_size: int, in_size: int) -> np.ndarray:
    # PyTorch 'nearest' mapping: src = floor(dst * in / out), exact integer math.
    dst = np.arange(out_size, dtype=np.int64)
    src = (dst * in_size) // out_size
    return np.clip(src, 0, in_size - 1)


# ------------------------------- kernels ----------------------------------


def _w_gather_kernel(x_ref, r_ref, o_ref, *, compute_dtype):
    # Fast path: x_ref (B, H, W); r_ref (W, TK) one-hot selection matrix whose
    # columns are tiled s times so the H replication comes for free; o_ref
    # (B, H, TK).  Single lane-dense matmul, M = B*H.
    x = x_ref[...]
    if x.dtype != compute_dtype:
        x = x.astype(compute_dtype)
    out = jnp.einsum("bhw,wk->bhk", x, r_ref[...],
                     preferred_element_type=jnp.float32)
    o_ref[...] = out.astype(o_ref.dtype)


def _hw_gather_kernel(l_ref, x_ref, r_ref, o_ref, *, compute_dtype):
    # General fallback (H_out not an integer multiple of H): o = L @ (x @ R)
    # per channel, batched over the channel block, input dtype + f32 accum.
    x = x_ref[...]
    if x.dtype != compute_dtype:
        x = x.astype(compute_dtype)
    t = jnp.einsum("bhw,wk->bhk", x, r_ref[...],
                   preferred_element_type=jnp.float32)            # (B, H, TK) f32
    b = x.shape[0]
    l = l_ref[...].astype(jnp.float32)                            # (H_out, H)
    lb = jnp.broadcast_to(l[None], (b, l.shape[0], l.shape[1]))
    out = jnp.einsum("boh,bhk->bok", lb, t,
                     preferred_element_type=jnp.float32)          # (B, H_out, TK)
    o_ref[...] = out.astype(o_ref.dtype)


# ------------------------------ tiling logic -------------------------------


def _choose_tiling(nc, h_in, w_in, rows_out, k_total, x_bytes, o_bytes,
                   sel_bytes, per_b_extra=0, budget=6 * 1024 * 1024):
    """Pick (channel block B, output lane tile TK).

    Sized so one block set (x slab + output slab + selection-matrix tile) stays
    well under the default scoped-VMEM limit after double-buffering (and fits
    v7x's smaller 64 MiB VMEM)."""
    tk = k_total

    def cost(b, t):
        return (b * (h_in * w_in * x_bytes + rows_out * t * o_bytes + per_b_extra)
                + w_in * t * sel_bytes)

    # Only shrink the lane tile in multiples of 128 that evenly divide k_total.
    while cost(1, tk) > budget and tk % 256 == 0:
        tk //= 2

    per_b = h_in * w_in * x_bytes + rows_out * tk * o_bytes + per_b_extra
    fixed = w_in * tk * sel_bytes
    cap = max(1, (budget - fixed) // per_b) if budget > fixed else 1
    if nc >= 2:
        cap = min(cap, max(1, nc // 2))  # keep >=2 channel steps (megacore / v7x 2 TCs)
    b = 1
    for d in range(1, nc + 1):
        if nc % d == 0 and d <= cap:
            b = d
    return b, tk


# ------------------------------- wrapper -----------------------------------


def interpolate_nearest(x, size=None, scale_factor=None):
    """Nearest-neighbor interpolation of an NCHW tensor (F.interpolate equiv.)."""
    N, C, H, W = x.shape
    if size is not None:
        H_out, W_out = (size, size) if isinstance(size, int) else tuple(size)
    elif scale_factor is not None:
        # TODO(synk): PyTorch's recompute_scale_factor semantics for non-integer
        # scales are not reproduced; floor(in * scale) is used.
        H_out = int(math.floor(H * float(scale_factor)))
        W_out = int(math.floor(W * float(scale_factor)))
    else:
        raise ValueError("either size or scale_factor must be given")

    ih = _nearest_src_index(H_out, H)
    iw = _nearest_src_index(W_out, W)

    NC = N * C
    x_flat = x.reshape(NC, H, W)
    compute_dtype = jnp.bfloat16 if x.dtype == jnp.bfloat16 else jnp.float32
    x_bytes = np.dtype(x.dtype).itemsize
    sel_bytes = np.dtype(compute_dtype).itemsize

    # W-axis one-hot selection matrix: R[w, wo] = (iw[wo] == w).
    r_np = np.zeros((W, W_out), dtype=np.float32)
    r_np[iw, np.arange(W_out)] = 1.0

    if H_out % H == 0:
        # Fast path: H upscaling is a pure row repeat (ih == repeat(arange(H), s)).
        # Fold the repeat into the columns of the selection matrix so a single
        # (B*H, W) @ (W, s*W_out) matmul produces the output viewed as
        # (NC, H, s*W_out); the final reshape to (N, C, H*s, W_out) is contiguous.
        s = H_out // H
        K = s * W_out
        rw = jnp.asarray(np.tile(r_np, (1, s)), dtype=compute_dtype)
        B, TK = _choose_tiling(NC, H, W, H, K, x_bytes, x_bytes, sel_bytes)
        grid = (NC // B, K // TK)
        kernel = functools.partial(_w_gather_kernel, compute_dtype=compute_dtype)
        cost = pl.CostEstimate(
            flops=2 * NC * H * W * K,
            transcendentals=0,
            bytes_accessed=NC * H * W * x_bytes + NC * H * K * x_bytes
                           + W * K * sel_bytes)
        out = pl.pallas_call(
            kernel,
            out_shape=jax.ShapeDtypeStruct((NC, H, K), x.dtype),
            grid=grid,
            in_specs=[
                pl.BlockSpec((B, H, W), lambda i, j: (i, 0, 0)),   # x slab
                pl.BlockSpec((W, TK), lambda i, j: (0, j)),        # selection cols
            ],
            out_specs=pl.BlockSpec((B, H, TK), lambda i, j: (i, 0, j)),
            compiler_params=pltpu.CompilerParams(
                dimension_semantics=("parallel", "parallel"),
                vmem_limit_bytes=32 * 1024 * 1024),
            cost_estimate=cost,
        )(x_flat, rw)
        return out.reshape(N, C, H_out, W_out)

    # General path (downscale / non-multiple sizes): keep the H one-hot matmul,
    # batched over the channel block, in the input dtype with f32 accumulation.
    l_np = np.zeros((H_out, H), dtype=np.float32)
    l_np[np.arange(H_out), ih] = 1.0
    L = jnp.asarray(l_np, dtype=compute_dtype)
    R = jnp.asarray(r_np, dtype=compute_dtype)
    B, TK = _choose_tiling(NC, H, W, H_out, W_out, x_bytes, x_bytes, sel_bytes,
                           per_b_extra=H_out * H * 4)
    grid = (NC // B, W_out // TK)
    kernel = functools.partial(_hw_gather_kernel, compute_dtype=compute_dtype)
    cost = pl.CostEstimate(
        flops=2 * NC * H * W * W_out + 2 * NC * H_out * H * W_out,
        transcendentals=0,
        bytes_accessed=NC * H * W * x_bytes + NC * H_out * W_out * x_bytes
                       + (H_out * H + W * W_out) * sel_bytes)
    out = pl.pallas_call(
        kernel,
        out_shape=jax.ShapeDtypeStruct((NC, H_out, W_out), x.dtype),
        grid=grid,
        in_specs=[
            pl.BlockSpec((H_out, H), lambda i, j: (0, 0)),     # L (resident)
            pl.BlockSpec((B, H, W), lambda i, j: (i, 0, 0)),   # x slab
            pl.BlockSpec((W, TK), lambda i, j: (0, j)),        # R cols
        ],
        out_specs=pl.BlockSpec((B, H_out, TK), lambda i, j: (i, 0, j)),
        compiler_params=pltpu.CompilerParams(
            dimension_semantics=("parallel", "parallel"),
            vmem_limit_bytes=32 * 1024 * 1024),
        cost_estimate=cost,
    )(L, x_flat, R)
    return out.reshape(N, C, H_out, W_out)


class Interpolate:
    """Equivalent of the PyTorch module (only the default mode='nearest')."""

    def __init__(self, size=None, scale_factor=None, mode="nearest",
                 align_corners=False):
        if mode != "nearest":
            # TODO(synk): bilinear/bicubic would need separable interpolation-
            # weight matrices instead of one-hot selection; only the module's
            # default mode is implemented.
            raise NotImplementedError("only mode='nearest' is implemented")
        del align_corners  # ignored by PyTorch for 'nearest'
        self.size = size
        self.scale_factor = scale_factor

    def __call__(self, x):
        return interpolate_nearest(x, size=self.size,
                                   scale_factor=self.scale_factor)


if __name__ == "__main__":
    key = jax.random.PRNGKey(0)
    N, C, H, W = 2, 4, 16, 16
    scale_factor = 2
    x = jax.random.normal(key, (N, C, H, W), dtype=jnp.float32)
    x_np = np.asarray(x)

    # Integer-upscale fast path (the module's typical usage).
    mod = Interpolate(scale_factor=scale_factor)
    out = jax.block_until_ready(mod(x))
    ih = _nearest_src_index(H * scale_factor, H)
    iw = _nearest_src_index(W * scale_factor, W)
    ref = x_np[:, :, ih, :][:, :, :, iw]
    assert out.shape == (N, C, H * scale_factor, W * scale_factor), out.shape
    assert out.dtype == x.dtype, out.dtype
    np.testing.assert_allclose(np.asarray(out), ref, rtol=1e-6, atol=1e-6)

    # General `size=` path (H_out not a multiple of H).
    out2 = jax.block_until_ready(interpolate_nearest(x, size=(24, 20)))
    ih2 = _nearest_src_index(24, H)
    iw2 = _nearest_src_index(20, W)
    ref2 = x_np[:, :, ih2, :][:, :, :, iw2]
    assert out2.shape == (N, C, 24, 20), out2.shape
    np.testing.assert_allclose(np.asarray(out2), ref2, rtol=1e-6, atol=1e-6)

    print("KERNEL_OK")
</pallas_src>

<mosaic_0001>
module attributes {stable_mosaic.version = 11 : i64} {
  func.func @_w_gather_kernel(%arg0: i32, %arg1: i32, %arg2: memref<4x16x16xf32, #tpu.memory_space<vmem>>, %arg3: memref<16x64xf32, #tpu.memory_space<vmem>>, %arg4: memref<4x16x64xf32, #tpu.memory_space<vmem>>) attributes {dimension_semantics = [#tpu.dimension_semantics<parallel>, #tpu.dimension_semantics<parallel>], iteration_bounds = array<i64: 2, 1>, scalar_prefetch = 0 : i64, scratch_operands = 0 : i64, tpu.core_type = #tpu.core_type<tc>, window_params = [{transform_indices = @transform_0, window_bounds = array<i64: 4, 16, 16>}, {transform_indices = @transform_1, window_bounds = array<i64: 16, 64>}, {transform_indices = @transform_2, window_bounds = array<i64: 4, 16, 64>}]} {
    %c0 = arith.constant 0 : index
    %c0_0 = arith.constant 0 : index
    %c0_1 = arith.constant 0 : index
    %0 = vector.load %arg2[%c0, %c0_0, %c0_1] : memref<4x16x16xf32, #tpu.memory_space<vmem>>, vector<4x16x16xf32>
    %c0_2 = arith.constant 0 : index
    %c0_3 = arith.constant 0 : index
    %1 = vector.load %arg3[%c0_2, %c0_3] : memref<16x64xf32, #tpu.memory_space<vmem>>, vector<16x64xf32>
    "tpu.trace_start"() <{level = 10 : i32, message = "bhw,wk->bhk"}> : () -> ()
    %cst = arith.constant dense<0.000000e+00> : vector<4x16x64xf32>
    %2 = tpu.matmul %0, %1, %cst {dimension_numbers = #tpu.dot_dimension_numbers<[2], [0], [0, 1], [1], [0, 0, 0, 1, 1, 1], [], []>} : vector<4x16x16xf32>, vector<16x64xf32>, vector<4x16x64xf32> -> vector<4x16x64xf32>
    "tpu.trace_stop"() : () -> ()
    %c0_4 = arith.constant 0 : index
    %c0_5 = arith.constant 0 : index
    %c0_6 = arith.constant 0 : index
    %3 = vector.load %arg4[%c0_4, %c0_5, %c0_6] : memref<4x16x64xf32, #tpu.memory_space<vmem>>, vector<4x16x64xf32>
    tpu.vector_store %arg4[%c0_4, %c0_5, %c0_6], %2 {strides = array<i32>} : memref<4x16x64xf32, #tpu.memory_space<vmem>>, vector<4x16x64xf32>,
    return
  }
  func.func @transform_0(%arg0: i32, %arg1: i32) -> (i32, i32, i32) {
    %c0_i32 = arith.constant 0 : i32
    %c0_i32_0 = arith.constant 0 : i32
    %c0_i32_1 = arith.constant 0 : i32
    return %arg0, %c0_i32, %c0_i32_0 : i32, i32, i32
  }
  func.func @transform_1(%arg0: i32, %arg1: i32) -> (i32, i32) {
    %c0_i32 = arith.constant 0 : i32
    %c0_i32_0 = arith.constant 0 : i32
    return %c0_i32, %arg1 : i32, i32
  }
  func.func @transform_2(%arg0: i32, %arg1: i32) -> (i32, i32, i32) {
    %c0_i32 = arith.constant 0 : i32
    %c0_i32_0 = arith.constant 0 : i32
    return %arg0, %c0_i32, %arg1 : i32, i32, i32
  }
}

</mosaic_0001>

<bundles_post_ra>
// kernel: tpu_custom_call.1
= control target key start
LH: loop header
LB: loop body
LE: loop exit
PB: predicated region body
PF: predicated region fallthrough
CT: control target
= control target key end

     0   :  { %7 = vsyncpa [#allocation3], 0  ;;  %s968_s0 = inlined_call_operand.hbm [shape: f32[8,16,16], index: 0, kind: input, shape index: {}]   ;;  %s969_s1 = inlined_call_operand.hbm [shape: f32[16,64], index: 1, kind: input, shape index: {}]   ;;  %s970_s2 = inlined_call_operand.hbm [shape: f32[8,16,64], index: 2, kind: output, shape index: {}]  }
   0x1   :  { %9 = vsyncpa [#allocation3 + $0x1], 0 }
   0x2   :  { %10 = vsyncpa [#allocation6], 0 }
   0x3   :  { %11 = vsyncpa [#allocation4], 0 }
   0x4   :  { %13 = vsyncpa [#allocation4 + $0x1], 0  ;;  %s761_s9 = smov 0   ;;  %s763_s10 = smov 0  }
   0x5   :  { %s765_s11 = smov 0   ;;  %s767_s12 = smov 0  }
   0x6   :  { %s769_s13 = smov 0   ;;  %s771_s14 = smov 0  }
   0x7 LB: > { %s461_s15 = sadd.s32 4294967295, %s737_s14   ;;  %s462_s16 = sadd.s32 4294967294, %s737_s14   ;;  %s737_s14 = sphi %s771_s14, %s19_s14   ;;  %s733_s13 = sphi %s769_s13, %s990_s13   ;;  %s729_s12 = sphi %s767_s12, %s989_s12   ;;  %s725_s11 = sphi %s765_s11, %s988_s11   ;;  %s721_s10 = sphi %s763_s10, %s987_s10   ;;  %s717_s9 = sphi %s761_s9, %s986_s9  }
   0x8   : > { %p51_p0 = scmp.ne.s32.totalorder %s721_s10, %s717_s9  ;;  %p795_p1 = scmp.eq.s32.totalorder %s461_s15, 0 }
   0x9   : > { %p799_p2 = scmp.eq.s32.totalorder %s461_s15, 1  ;;  %p109_p3 = scmp.eq.s32.totalorder %s462_s16, 1 }
   0xa   : > { %p805_p4 = por %p795_p1, %p51_p0  ;;  %p463_p5 = scmp.ge.s32.totalorder %s737_s14, 1 }
   0xb   : > { %p810_p6 = por %p109_p3, %p51_p0  ;;  %p116_p7 = scmp.lt.s32.totalorder %s737_s14, 3 }
   0xc   : > { %s975_s19 = scalar_select %p805_p4, 1, 0 }
   0xd   : > { %s976_s20 = scalar_select %p810_p6, 1, 0 }
   0xe   : > { %p815_p8 = pnand %p463_p5, %p116_p7  ;;  %s739_s22 = smov [#allocation5]  }
   0xf   : > { %s130_s23 = sshll.u32 %s739_s22, 4  ;;  %s31_s25 = sadd.s32 1, %s733_s13  ;;  %s131_s23 = int_to_ptr.vmem [resolvable:$true] %s130_s23 }
  0x10   : > { %p530_p9 = pneg %p815_p8  ;;  %s610_s26 = scalar_lea.vmem %s131_s23, 256 }
  0x11   : > { %p611_p13 = scmp.ne.s32.totalorder %s131_s23, %s610_s26  ;;  %p618_p5 = scmp.lt.s32.totalorder %s131_s23, %s131_s23 }
  0x12   : > { %p824_p11 = pnand %p530_p9, %p795_p1  ;;  %p619_p7 = scmp.lt.s32.totalorder %s610_s26, %s610_s26 }
  0x14   : > { %p601_p12 = pneg %p824_p11  ;;  %p620_p6 = por %p619_p7, %p618_p5 }
  0x16   : > { %p613_p0 = pnand %p611_p13, %p601_p12 }
  0x18   : > { %p614_p3 = pneg %p613_p0 }
  0x1a   : > { %p621_p4 = pnand %p620_p6, %p614_p3 }
  0x1c   : > { %624 = shalt.err (!%p621_p4)
}
  0x1d   : > { %s972_s27 = smov 128   ;;  %s741_s28 = smov 8  }
  0x1e   : > { %533 = dma.hbm_to_vmem [thread:$0]  (!%p824_p11), %s969_s1, 256, %s131_s23, [#allocation6], %s972_s27, %s972_s27, %s741_s28  }
  0x1f   : > { %p33_p4 = scmp.ge.s32.totalorder %s31_s25, 2  ;;  %s38_s3 = sadd.s32 1, %s725_s11 }
  0x20   : > { %p45_p6 = scmp.ne.s32.totalorder %s725_s11, %s721_s10  ;;  %p46_p9 = scmp.eq.s32.totalorder %s737_s14, 0 }
  0x21   : > { %s992_s25 = smov (%p33_p4, %s31_s25), 0  ;;  %p543_p0 = scmp.lt.s32.totalorder %s737_s14, 2 }
  0x22   : > { %p845_p12 = por %p46_p9, %p45_p6  ;;  %p851_p13 = por %p799_p2, %p45_p6 }
  0x23   : > { %s35_s6 = ssub.s32 %s733_s13, %s992_s25  ;;  %s144_s7 = sand.u32 1, %s725_s11  }
  0x24   : > { %p36_p11 = scmp.eq.s32.totalorder %s35_s6, 0  ;;  %s466_s8 = sshll.u32 %s144_s7, 6 }
  0x25   : > { %s489_s16 = sshll.u32 %s733_s13, 10  ;;  %s148_s26 = scalar_lea.vmem [#allocation2], %s466_s8 }
  0x26   : > { %s860_s15 = scalar_select %p36_p11, %s725_s11, %s38_s3  }
  0x27   : > { %s155_s24 = scalar_lea.hbm %s968_s0, %s489_s16  ;;  %s156_s29 = sshll.u32 %s148_s26, 4  ;;  %s157_s29 = int_to_ptr.vmem [resolvable:$true] %s156_s29 }
  0x28   : > { %p868_p2 = pnand %p543_p0, %p845_p12  ;;  %s145_s30 = scalar_lea.sflag [#allocation3], %s144_s7 }
  0x29   : > { %s638_s6 = scalar_lea.vmem %s157_s29, 1024  ;;  %s742_s3 = smov [#allocation2]  }
  0x2a   : > { %p627_p3 = pneg %p868_p2  ;;  %p639_p5 = scmp.ne.s32.totalorder %s157_s29, %s638_s6 }
  0x2b   : > { %s643_s27 = sshll.u32 %s742_s3, 4  ;;  %s644_s27 = int_to_ptr.vmem [resolvable:$false] %s643_s27 }
  0x2c   : > { %p641_p7 = pnand %p639_p5, %p627_p3  ;;  %s645_s16 = scalar_lea.vmem %s644_s27, 2048 }
  0x2d   : > { %p646_p6 = scmp.lt.s32.totalorder %s157_s29, %s644_s27  ;;  %p647_p9 = scmp.lt.s32.totalorder %s645_s16, %s638_s6 }
  0x2e   : > { %p642_p4 = pneg %p641_p7 }
  0x2f   : > { %p648_p11 = por %p647_p9, %p646_p6 }
  0x31   : > { %p649_p10 = pnand %p648_p11, %p642_p4 }
  0x33   : > { %652 = shalt.err (!%p649_p10)
}
  0x34   : > { %s982_s4 = smov 128   ;;  %168 = sbr.rel (%p815_p8) target bundleno = 279 (0x117), region = 28 }
  0x35   : > { %537 = dma.hbm_to_vmem [thread:$0]  (!%p868_p2), %s155_s24, 1024, %s157_s29, %s145_s30, %s982_s4, %s982_s4, %s741_s28  }
  0x36   : > { %s882_s7 = sand.u32 (!%p815_p8), 1, %s721_s10   ;;  %p983_p10 = scmp.ne.s32.totalorder (!%p815_p8), %s975_s19, 0 }
  0x37   : > { %s471_s27 = sshll.u32 (!%p815_p8), %s882_s7, 6  ;;  %s171_s8 = scalar_lea.sflag (!%p815_p8), [#allocation3], %s882_s7 }
  0x38   : > { %s174_s22 = scalar_lea.vmem (!%p815_p8), [#allocation2], %s471_s27 }
  0x39   : > { %704 = dma.done.wait (%p983_p10), %s171_s8, 1024  }
  0x3a   : > { %706 = vsyncadd (%p983_p10), %s171_s8, 4294966272 }
  0x3b   : > { %708 = dma.done.wait (%p795_p1), [#allocation6], 256  }
  0x3c   : > { %710 = vsyncadd (%p795_p1), [#allocation6], 4294967040  ;;  %v210_v0 = vld [vmem:[#allocation5 + $0x8] sm:$0xff]  ;;  %v209_v1 = vld [vmem:[#allocation5] sm:$0xff]  ;;  %vm211_vm0 = vcmask 130048   ;;  %vm341_vm1 = vcmask 523264  }
  0x3d   : > { %502 = vmatprep.subr.mxu0 %v210_v0  ;;  %518 = vmatprep.subr.mxu1 %v210_v0  ;;  %v201_v2 = vld [vmem:[%s174_s22] sm:$0xff]  ;;  %v202_v4 = vld [vmem:[%s174_s22 + $0x8] sm:$0xff]  ;;  %v203_v6 = vld [vmem:[%s174_s22 + $0x10] sm:$0xff]  ;;  %s198_s17 = scalar_lea.vmem [#allocation7], %s471_s27  ;;  %s491_s21 = sshll.u32 %s729_s12, 10 }
  0x3e   : > { %503 = vmatpush3.msra.mxu0 %v210_v0  ;;  %520 = vmatpush3.msra.mxu1 %v210_v0  ;;  %v205_v3 = vld [vmem:[%s174_s22 + $0x20] sm:$0xff]  ;;  %v206_v5 = vld [vmem:[%s174_s22 + $0x28] sm:$0xff]  ;;  %v207_v7 = vld [vmem:[%s174_s22 + $0x30] sm:$0xff]  ;;  %s366_s19 = sshll.u32 %s198_s17, 4  ;;  %s916_s24 = scalar_lea.hbm %s970_s2, %s491_s21  ;;  %s909_s19 = int_to_ptr.vmem [resolvable:$true] %s366_s19 }
  0x3f   : > { %504 = vmatprep.subr.mxu0 %v209_v1  ;;  %519 = vmatprep.subr.mxu1 %v209_v1  ;;  %v204_v8 = vld [vmem:[%s174_s22 + $0x18] sm:$0xff]  ;;  %s351_s12 = scalar_lea.sflag [#allocation4], %s882_s7  ;;  %s653_s26 = scalar_lea.vmem %s909_s19, 1024 }
  0x40   : > { %505 = vmatpush3.msra.mxu0 %v209_v1  ;;  %521 = vmatpush3.msra.mxu1 %v209_v1  ;;  %v208_v9 = vld [vmem:[%s174_s22 + $0x38] sm:$0xff]  ;;  %p654_p1 = scmp.ne.s32.totalorder %s909_s19, %s653_s26  ;;  %s743_s29 = smov [#allocation7]  }
  0x41   : > { %506 = vmatprep.mubr.msk.f32.mxu0 %vm211_vm0, %v201_v2  ;;  %512 = vmatprep.mubr.msk.f32.mxu1 %vm211_vm0, %v205_v3  ;;  %s657_s18 = sshll.u32 %s743_s29, 4  ;;  %s658_s18 = int_to_ptr.vmem [resolvable:$false] %s657_s18 }
  0x42   : > { %507 = vmatmul.mubr.msk.f32.vlgmr.msra.gmra.mxu0 %vm211_vm0, %v202_v4  ;;  %513 = vmatmul.mubr.msk.f32.vlgmr.msra.gmra.mxu1 %vm211_vm0, %v206_v5  ;;  %p655_p8 = pnand %p654_p1, %p851_p13  ;;  %s659_s30 = scalar_lea.vmem %s658_s18, 2048 }
  0x43   : > { %509 = vmatprep.mubr.msk.f32.mxu0 %vm211_vm0, %v203_v6  ;;  %515 = vmatprep.mubr.msk.f32.mxu1 %vm211_vm0, %v207_v7  ;;  %p660_p0 = scmp.lt.s32.totalorder %s909_s19, %s658_s18  ;;  %p661_p2 = scmp.lt.s32.totalorder %s659_s30, %s653_s26 }
  0x44   : > { %p656_p12 = pneg %p655_p8 }
  0x45   : > { %p662_p3 = por %p661_p2, %p660_p0 }
  0x46   : > { %510 = vmatmul.mubr.msk.f32.gmra.mxu0 %vm211_vm0, %v204_v8  ;;  %516 = vmatmul.mubr.msk.f32.gmra.mxu1 %vm211_vm0, %v208_v9 }
  0x47   : > { %p663_p5 = pnand %p662_p3, %p656_p12 }
 0x102   : > { %v508_v10 = vpop.f32.mrf.mxu0  ;;  %v514_v11 = vpop.f32.mrf.mxu1 }
 0x103   : > { %343 = vst.msk [vmem:[%s198_s17 + $0x8] sm:$0xff] %vm341_vm1, %v508_v10  ;;  %347 = vst.msk [vmem:[%s198_s17 + $0x28] sm:$0xff] %vm341_vm1, %v514_v11 }
 0x104   : > { %v302_v12 = vpop.f32.mrf.mxu0  ;;  %v322_v13 = vpop.f32.mrf.mxu1 }
 0x105   : > { %342 = vst.msk [vmem:[%s198_s17] sm:$0xff] %vm341_vm1, %v302_v12  ;;  %346 = vst.msk [vmem:[%s198_s17 + $0x20] sm:$0xff] %vm341_vm1, %v322_v13 }
 0x106   : > { %v511_v14 = vpop.f32.mrf.mxu0  ;;  %v517_v15 = vpop.f32.mrf.mxu1 }
 0x107   : > { %345 = vst.msk [vmem:[%s198_s17 + $0x18] sm:$0xff] %vm341_vm1, %v511_v14  ;;  %349 = vst.msk [vmem:[%s198_s17 + $0x38] sm:$0xff] %vm341_vm1, %v517_v15 }
 0x108   : > { %v312_v16 = vpop.f32.mrf.mxu0  ;;  %v332_v17 = vpop.f32.mrf.mxu1 }
 0x109   : > { %344 = vst.msk [vmem:[%s198_s17 + $0x10] sm:$0xff] %vm341_vm1, %v312_v16  ;;  %348 = vst.msk [vmem:[%s198_s17 + $0x30] sm:$0xff] %vm341_vm1, %v332_v17 }
 0x10a   : > { %666 = shalt.err (!%p663_p5)
}
 0x10b   : > { %s667_s6 = scalar_lea.hbm %s916_s24, 1024  ;;  %s671_s4 = scalar_lea.hbm %s970_s2, 2048 }
 0x10c   : > { %p668_p7 = scmp.ne.s32.totalorder %s916_s24, %s667_s6  ;;  %p672_p9 = scmp.lt.s32.totalorder %s916_s24, %s970_s2 }
 0x10d   : > { %p673_p11 = scmp.lt.s32.totalorder %s671_s4, %s667_s6 }
 0x10e   : > { %p669_p4 = pnand %p668_p7, %p851_p13 }
 0x10f   : > { %p674_p10 = por %p673_p11, %p672_p9 }
 0x110   : > { %p670_p6 = pneg %p669_p4 }
 0x112   : > { %p675_p1 = pnand %p674_p10, %p670_p6 }
 0x114   : > { %678 = shalt.err (!%p675_p1)
}
 0x115   : > { %s744_s22 = smov 128   ;;  %s745_s17 = smov 8  }
 0x116   : > { %528 = dma.vmem_to_hbm [thread:$0]  (%p851_p13), %s909_s19, 1024, %s916_s24, %s351_s12, %s744_s22, %s744_s22, %s745_s17  }
 0x117 PF: > { %s381_s21 = sand.u32 1, %s717_s9   ;;  %p984_p8 = scmp.ne.s32.totalorder %s976_s20, 0 }
 0x118   : > { %p985_p12 = scmp.ge.s32.totalorder %s737_s14, 2  ;;  %s382_s28 = scalar_lea.sflag [#allocation4], %s381_s21 }
 0x11a   : > { %p539_p0 = pnand %p985_p12, %p984_p8 }
 0x11c   : > { %p540_p2 = pneg %p539_p0 }
 0x11e   : > { %712 = dma.done.wait (%p540_p2), %s382_s28, 1024  }
 0x11f   : > { %714 = vsyncadd (%p540_p2), %s382_s28, 4294966272  ;;  %s19_s14 = sadd.s32 1, %s737_s14   ;;  %s986_s9 = smov %s721_s10 }
 0x120   : > { %p16_p3 = scmp.ge.s32.totalorder %s19_s14, 4   ;;  %s987_s10 = smov %s725_s11 }
 0x121   : > { %s988_s11 = smov %s860_s15  ;;  %s989_s12 = smov %s733_s13 }
 0x122   : > { %s990_s13 = smov %s992_s25  ;;  %18 = sbr.rel (!%p16_p3) target bundleno = 7 (0x7), region = 78 }
 0x127   :  { %387 = vsyncpa [#allocation3], 1 }
 0x128   :  { %389 = vsyncpa [#allocation3 + $0x1], 1 }
 0x129   :  { %390 = vsyncpa [#allocation6], 1 }
 0x12a   :  { %391 = vsyncpa [#allocation4], 1 }
 0x12b   :  { %393 = vsyncpa [#allocation4 + $0x1], 1 }

</bundles_post_ra>
